<compile_context>
chip_gen: v7x
topology: tpu7x:2x2x1
jax: 0.10.0
libtpu: 0.0.40
codegen_flags: <defaults>
</compile_context>

<pallas_src>
import math

import jax
import jax.numpy as jnp
import numpy as np
from jax.experimental import pallas as pl
from jax.experimental.pallas import tpu as pltpu

# Exponential-decay mixture coefficients for the four user-history embeddings.
_SUM0 = math.exp(-4.0) + math.exp(-3.0) + math.exp(-2.0) + math.exp(-1.0)
_C1 = math.exp(-4.0) / _SUM0
_C2 = math.exp(-3.0) / _SUM0
_C3 = math.exp(-2.0) / _SUM0
_C4 = math.exp(-1.0) / _SUM0


def dcer_kernel(
    eu1_ref, eu2_ref, eu3_ref, eu4_ref, ev_ref,
    w1u_ref, w1v_ref, b1_ref,          # layer 1: [w_ur1*bn1 | 0], [0 | w_vr1*bn2]
    w2_ref, b2_ref,                    # layer 2: block-diag [w_ur2 0; 0 w_vr2]
    w3_ref, b3_ref,                    # layer 3: w_uv1 (bn3 folded)
    w4_ref, b4_ref,                    # layer 4: w_uv2 (bn4 folded)
    w5_ref, b5_ref,                    # layer 5: w_uv3^T (1,16), bias (1,1)
    out_ref,                           # (1, TB) lane-dense scores
):
    f32 = jnp.float32
    bf16 = jnp.bfloat16

    # Exponential-decay mixture of the four user-history embeddings (VPU, f32).
    embeds_u = (eu1_ref[...] * _C1 + eu2_ref[...] * _C2
                + eu3_ref[...] * _C3 + eu4_ref[...] * _C4)
    embeds_v = ev_ref[...]

    # Layer 1 (u & v branches fused into one width-2D activation, BN folded):
    #   z1[:, :D]  = relu(bn1(w_ur1(embeds_u)))
    #   z1[:, D:]  = relu(bn2(w_vr1(embeds_v)))
    h1 = (jnp.dot(embeds_u.astype(bf16), w1u_ref[...], preferred_element_type=f32)
          + jnp.dot(embeds_v.astype(bf16), w1v_ref[...], preferred_element_type=f32)
          + b1_ref[...])
    z1 = jnp.maximum(h1, 0.0)                      # dropout is identity (eval)

    # Layer 2: block-diagonal [w_ur2 0; 0 w_vr2] -> x_uv = cat(x_u, x_v).
    x_uv = (jnp.dot(z1.astype(bf16), w2_ref[...], preferred_element_type=f32)
            + b2_ref[...])

    # Layer 3: x = relu(bn3(w_uv1(x_uv)))
    x = jnp.maximum(
        jnp.dot(x_uv.astype(bf16), w3_ref[...], preferred_element_type=f32)
        + b3_ref[...], 0.0)

    # Layer 4: x = relu(bn4(w_uv2(x)))
    x = jnp.maximum(
        jnp.dot(x.astype(bf16), w4_ref[...], preferred_element_type=f32)
        + b4_ref[...], 0.0)

    # Layer 5: scores^T = w_uv3^T @ x^T  -> (1, TB), lane-dense writeback.
    scores_t = jax.lax.dot_general(
        w5_ref[...], x.astype(bf16),
        dimension_numbers=(((1,), (1,)), ((), ())),
        preferred_element_type=f32)
    out_ref[...] = scores_t + b5_ref[...]


def _round_up(x, m):
    return ((x + m - 1) // m) * m


def prepare_params(p):
    """Fold BN into Linears, build merged-branch weights, cast matmul operands
    to bf16. Biases / shifts stay f32 (added after f32 accumulation)."""
    f32, bf16 = jnp.float32, jnp.bfloat16
    eps = 1e-5

    def fold(w, b, bn):
        gamma, beta, mean, var = bn
        scale = gamma / jnp.sqrt(var + eps)
        shift = beta - mean * scale
        return w * scale, b * scale + shift

    D = p["w_ur1"].shape[0]
    w_ur1f, b_ur1f = fold(p["w_ur1"], p["b_ur1"], p["bn1"])
    w_vr1f, b_vr1f = fold(p["w_vr1"], p["b_vr1"], p["bn2"])
    w_uv1f, b_uv1f = fold(p["w_uv1"], p["b_uv1"], p["bn3"])
    w_uv2f, b_uv2f = fold(p["w_uv2"], p["b_uv2"], p["bn4"])

    z = jnp.zeros((D, D), f32)
    return {
        "w1u": jnp.concatenate([w_ur1f, z], axis=1).astype(bf16),     # (D, 2D)
        "w1v": jnp.concatenate([z, w_vr1f], axis=1).astype(bf16),     # (D, 2D)
        "b1": jnp.concatenate([b_ur1f, b_vr1f], axis=1).astype(f32),  # (1, 2D)
        "w2": jnp.concatenate(
            [jnp.concatenate([p["w_ur2"], z], axis=1),
             jnp.concatenate([z, p["w_vr2"]], axis=1)], axis=0).astype(bf16),
        "b2": jnp.concatenate([p["b_ur2"], p["b_vr2"]], axis=1).astype(f32),
        "w3": w_uv1f.astype(bf16), "b3": b_uv1f.astype(f32),
        "w4": w_uv2f.astype(bf16), "b4": b_uv2f.astype(f32),
        "w5": p["w_uv3"].T.astype(bf16),                              # (1, 16)
        "b5": p["b_uv3"].reshape(1, 1).astype(f32),                   # (1, 1)
    }


def dcer_forward(embeds_u_1, embeds_u_2, embeds_u_3, embeds_u_4, embeds_v,
                 kparams, *, block_b=1024):
    """Runs the fused DCER head. Returns scores of shape (batch,)."""
    B, D = embeds_u_1.shape

    # Batch tile: always a multiple of 128 so the (1, TB) output store is an
    # unmasked, lane-dense vst. Single padded block for small B, else
    # block_b-row tiles pipelined over the grid.
    assert block_b % 128 == 0, "block_b must be a multiple of 128"
    if B <= block_b:
        TB = _round_up(max(B, 1), 128)
    else:
        TB = block_b
    B_pad = _round_up(B, TB)
    grid = (B_pad // TB,)

    def pad(x):
        x = x.astype(jnp.float32)
        return x if B_pad == B else jnp.pad(x, ((0, B_pad - B), (0, 0)))

    embeds = [pad(x) for x in
              (embeds_u_1, embeds_u_2, embeds_u_3, embeds_u_4, embeds_v)]

    kp = kparams
    weights = [kp["w1u"], kp["w1v"], kp["b1"], kp["w2"], kp["b2"],
               kp["w3"], kp["b3"], kp["w4"], kp["b4"], kp["w5"], kp["b5"]]

    emb_spec = pl.BlockSpec((TB, D), lambda i: (i, 0))
    # Constant index_map -> weights DMA'd once and kept VMEM-resident.
    const_spec = lambda a: pl.BlockSpec(a.shape, lambda i: (0, 0))

    grid_spec = pltpu.PrefetchScalarGridSpec(
        num_scalar_prefetch=0,
        grid=grid,
        in_specs=[emb_spec] * 5 + [const_spec(a) for a in weights],
        out_specs=pl.BlockSpec((1, TB), lambda i: (0, i)),
    )

    out = pl.pallas_call(
        dcer_kernel,
        out_shape=jax.ShapeDtypeStruct((1, B_pad), jnp.float32),
        grid_spec=grid_spec,
        compiler_params=pltpu.CompilerParams(
            dimension_semantics=("parallel",)),
    )(*embeds, *weights)
    return out[0, :B]  # scores.squeeze()


# ----------------------------------------------------------------------------
# Test scaffolding: deterministic params + pure-JAX f32 reference.
# ----------------------------------------------------------------------------
def _linear_init(key, fan_in, fan_out):
    """PyTorch nn.Linear default init: U(-1/sqrt(fan_in), 1/sqrt(fan_in))."""
    kw, kb = jax.random.split(key)
    bound = 1.0 / math.sqrt(fan_in)
    w = jax.random.uniform(kw, (fan_in, fan_out), jnp.float32, -bound, bound)
    b = jax.random.uniform(kb, (1, fan_out), jnp.float32, -bound, bound)
    return w, b


def _bn_params(key, n):
    """Deterministic eval-mode BatchNorm params (gamma, beta, mean, var)."""
    kg, kb, km, kv = jax.random.split(key, 4)
    gamma = 1.0 + 0.1 * jax.random.normal(kg, (1, n), jnp.float32)
    beta = 0.1 * jax.random.normal(kb, (1, n), jnp.float32)
    mean = 0.1 * jax.random.normal(km, (1, n), jnp.float32)
    var = 1.0 + 0.1 * jnp.abs(jax.random.normal(kv, (1, n), jnp.float32))
    return gamma, beta, mean, var


def _reference(embeds, p):
    """Pure-JAX f32 reference faithful to the PyTorch module (eval mode)."""
    eu1, eu2, eu3, eu4, ev = embeds
    eu = eu1 * _C1 + eu2 * _C2 + eu3 * _C3 + eu4 * _C4

    def bn(x, params):
        gamma, beta, mean, var = params
        return (x - mean) / jnp.sqrt(var + 1e-5) * gamma + beta

    xu = jax.nn.relu(bn(eu @ p["w_ur1"] + p["b_ur1"], p["bn1"]))
    xu = xu @ p["w_ur2"] + p["b_ur2"]
    xv = jax.nn.relu(bn(ev @ p["w_vr1"] + p["b_vr1"], p["bn2"]))
    xv = xv @ p["w_vr2"] + p["b_vr2"]
    xuv = jnp.concatenate([xu, xv], axis=1)
    x = jax.nn.relu(bn(xuv @ p["w_uv1"] + p["b_uv1"], p["bn3"]))
    x = jax.nn.relu(bn(x @ p["w_uv2"] + p["b_uv2"], p["bn4"]))
    return (x @ p["w_uv3"] + p["b_uv3"])[:, 0]


if __name__ == "__main__":
    B, D = 300, 32  # batch of (user, item) pairs, embed_dim

    key = jax.random.PRNGKey(0)
    keys = jax.random.split(key, 16)

    # "Encoder" outputs — stand-ins for enc_u_history_1..4 and enc_v_history.
    eu1 = jax.random.normal(keys[0], (B, D), jnp.float32)
    eu2 = jax.random.normal(keys[1], (B, D), jnp.float32)
    eu3 = jax.random.normal(keys[2], (B, D), jnp.float32)
    eu4 = jax.random.normal(keys[3], (B, D), jnp.float32)
    ev = jax.random.normal(keys[4], (B, D), jnp.float32)

    params = {}
    params["w_ur1"], params["b_ur1"] = _linear_init(keys[5], D, D)
    params["w_ur2"], params["b_ur2"] = _linear_init(keys[6], D, D)
    params["w_vr1"], params["b_vr1"] = _linear_init(keys[7], D, D)
    params["w_vr2"], params["b_vr2"] = _linear_init(keys[8], D, D)
    params["w_uv1"], params["b_uv1"] = _linear_init(keys[9], 2 * D, D)
    params["w_uv2"], params["b_uv2"] = _linear_init(keys[10], D, 16)
    params["w_uv3"], params["b_uv3"] = _linear_init(keys[11], 16, 1)
    params["bn1"] = _bn_params(keys[12], D)
    params["bn2"] = _bn_params(keys[13], D)
    params["bn3"] = _bn_params(keys[14], D)
    params["bn4"] = _bn_params(keys[15], 16)

    kparams = prepare_params(params)

    # block_b=128 -> B padded to 384, grid of 3 batch tiles (exercises the
    # pipelined grid + tail padding at small scale).
    scores = dcer_forward(eu1, eu2, eu3, eu4, ev, kparams, block_b=128)
    scores = jax.block_until_ready(scores)

    ref = _reference((eu1, eu2, eu3, eu4, ev), params)
    # Loose tolerance because matmul operands are cast to bf16 (f32 accum).
    np.testing.assert_allclose(np.asarray(scores), np.asarray(ref),
                               rtol=5e-2, atol=5e-2)
    print("KERNEL_OK")
</pallas_src>

<mosaic_0001>
module attributes {stable_mosaic.version = 11 : i64} {
  func.func @dcer_kernel(%arg0: i32, %arg1: memref<128x32xf32, #tpu.memory_space<vmem>>, %arg2: memref<128x32xf32, #tpu.memory_space<vmem>>, %arg3: memref<128x32xf32, #tpu.memory_space<vmem>>, %arg4: memref<128x32xf32, #tpu.memory_space<vmem>>, %arg5: memref<128x32xf32, #tpu.memory_space<vmem>>, %arg6: memref<32x64xbf16, #tpu.memory_space<vmem>>, %arg7: memref<32x64xbf16, #tpu.memory_space<vmem>>, %arg8: memref<1x64xf32, #tpu.memory_space<vmem>>, %arg9: memref<64x64xbf16, #tpu.memory_space<vmem>>, %arg10: memref<1x64xf32, #tpu.memory_space<vmem>>, %arg11: memref<64x32xbf16, #tpu.memory_space<vmem>>, %arg12: memref<1x32xf32, #tpu.memory_space<vmem>>, %arg13: memref<32x16xbf16, #tpu.memory_space<vmem>>, %arg14: memref<1x16xf32, #tpu.memory_space<vmem>>, %arg15: memref<1x16xbf16, #tpu.memory_space<vmem>>, %arg16: memref<1x1xf32, #tpu.memory_space<vmem>>, %arg17: memref<1x128xf32, #tpu.memory_space<vmem>>) attributes {dimension_semantics = [#tpu.dimension_semantics<parallel>], iteration_bounds = array<i64: 3>, scalar_prefetch = 0 : i64, scratch_operands = 0 : i64, tpu.core_type = #tpu.core_type<tc>, window_params = [{transform_indices = @transform_0, window_bounds = array<i64: 128, 32>}, {transform_indices = @transform_1, window_bounds = array<i64: 128, 32>}, {transform_indices = @transform_2, window_bounds = array<i64: 128, 32>}, {transform_indices = @transform_3, window_bounds = array<i64: 128, 32>}, {transform_indices = @transform_4, window_bounds = array<i64: 128, 32>}, {pipeline_mode = #tpu.pipeline_mode<synchronous>, transform_indices = @transform_5, window_bounds = array<i64: 32, 64>}, {pipeline_mode = #tpu.pipeline_mode<synchronous>, transform_indices = @transform_6, window_bounds = array<i64: 32, 64>}, {pipeline_mode = #tpu.pipeline_mode<synchronous>, transform_indices = @transform_7, window_bounds = array<i64: 1, 64>}, {pipeline_mode = #tpu.pipeline_mode<synchronous>, transform_indices = @transform_8, window_bounds = array<i64: 64, 64>}, {pipeline_mode = #tpu.pipeline_mode<synchronous>, transform_indices = @transform_9, window_bounds = array<i64: 1, 64>}, {pipeline_mode = #tpu.pipeline_mode<synchronous>, transform_indices = @transform_10, window_bounds = array<i64: 64, 32>}, {pipeline_mode = #tpu.pipeline_mode<synchronous>, transform_indices = @transform_11, window_bounds = array<i64: 1, 32>}, {pipeline_mode = #tpu.pipeline_mode<synchronous>, transform_indices = @transform_12, window_bounds = array<i64: 32, 16>}, {pipeline_mode = #tpu.pipeline_mode<synchronous>, transform_indices = @transform_13, window_bounds = array<i64: 1, 16>}, {pipeline_mode = #tpu.pipeline_mode<synchronous>, transform_indices = @transform_14, window_bounds = array<i64: 1, 16>}, {pipeline_mode = #tpu.pipeline_mode<synchronous>, transform_indices = @transform_15, window_bounds = array<i64: 1, 1>}, {transform_indices = @transform_16, window_bounds = array<i64: 1, 128>}]} {
    %c0 = arith.constant 0 : index
    %c0_0 = arith.constant 0 : index
    %0 = vector.load %arg1[%c0, %c0_0] : memref<128x32xf32, #tpu.memory_space<vmem>>, vector<128x32xf32>
    %cst = arith.constant 0.0320586041 : f32
    %1 = vector.broadcast %cst : f32 to vector<128x32xf32>
    %2 = arith.mulf %0, %1 : vector<128x32xf32>
    %c0_1 = arith.constant 0 : index
    %c0_2 = arith.constant 0 : index
    %3 = vector.load %arg2[%c0_1, %c0_2] : memref<128x32xf32, #tpu.memory_space<vmem>>, vector<128x32xf32>
    %cst_3 = arith.constant 0.0871443152 : f32
    %4 = vector.broadcast %cst_3 : f32 to vector<128x32xf32>
    %5 = arith.mulf %3, %4 : vector<128x32xf32>
    %6 = arith.addf %2, %5 : vector<128x32xf32>
    %c0_4 = arith.constant 0 : index
    %c0_5 = arith.constant 0 : index
    %7 = vector.load %arg3[%c0_4, %c0_5] : memref<128x32xf32, #tpu.memory_space<vmem>>, vector<128x32xf32>
    %cst_6 = arith.constant 0.236882821 : f32
    %8 = vector.broadcast %cst_6 : f32 to vector<128x32xf32>
    %9 = arith.mulf %7, %8 : vector<128x32xf32>
    %10 = arith.addf %6, %9 : vector<128x32xf32>
    %c0_7 = arith.constant 0 : index
    %c0_8 = arith.constant 0 : index
    %11 = vector.load %arg4[%c0_7, %c0_8] : memref<128x32xf32, #tpu.memory_space<vmem>>, vector<128x32xf32>
    %cst_9 = arith.constant 0.643914282 : f32
    %12 = vector.broadcast %cst_9 : f32 to vector<128x32xf32>
    %13 = arith.mulf %11, %12 : vector<128x32xf32>
    %14 = arith.addf %10, %13 : vector<128x32xf32>
    %c0_10 = arith.constant 0 : index
    %c0_11 = arith.constant 0 : index
    %15 = vector.load %arg5[%c0_10, %c0_11] : memref<128x32xf32, #tpu.memory_space<vmem>>, vector<128x32xf32>
    %16 = arith.truncf %14 : vector<128x32xf32> to vector<128x32xbf16>
    %c0_12 = arith.constant 0 : index
    %c0_13 = arith.constant 0 : index
    %17 = vector.load %arg6[%c0_12, %c0_13] : memref<32x64xbf16, #tpu.memory_space<vmem>>, vector<32x64xbf16>
    %cst_14 = arith.constant dense<0.000000e+00> : vector<128x64xf32>
    %18 = tpu.matmul %16, %17, %cst_14 {dimension_numbers = #tpu.dot_dimension_numbers<[1], [0], [0], [1], [0, 0, 1, 1], [], []>} : vector<128x32xbf16>, vector<32x64xbf16>, vector<128x64xf32> -> vector<128x64xf32>
    %19 = arith.truncf %15 : vector<128x32xf32> to vector<128x32xbf16>
    %c0_15 = arith.constant 0 : index
    %c0_16 = arith.constant 0 : index
    %20 = vector.load %arg7[%c0_15, %c0_16] : memref<32x64xbf16, #tpu.memory_space<vmem>>, vector<32x64xbf16>
    %cst_17 = arith.constant dense<0.000000e+00> : vector<128x64xf32>
    %21 = tpu.matmul %19, %20, %cst_17 {dimension_numbers = #tpu.dot_dimension_numbers<[1], [0], [0], [1], [0, 0, 1, 1], [], []>} : vector<128x32xbf16>, vector<32x64xbf16>, vector<128x64xf32> -> vector<128x64xf32>
    %22 = arith.addf %18, %21 : vector<128x64xf32>
    %c0_18 = arith.constant 0 : index
    %c0_19 = arith.constant 0 : index
    %23 = vector.load %arg8[%c0_18, %c0_19] : memref<1x64xf32, #tpu.memory_space<vmem>>, vector<1x64xf32>
    %24 = vector.broadcast %23 : vector<1x64xf32> to vector<128x64xf32>
    %25 = arith.addf %22, %24 : vector<128x64xf32>
    %cst_20 = arith.constant 0.000000e+00 : f32
    %26 = vector.broadcast %cst_20 : f32 to vector<128x64xf32>
    %27 = arith.maximumf %25, %26 : vector<128x64xf32>
    %28 = arith.truncf %27 : vector<128x64xf32> to vector<128x64xbf16>
    %c0_21 = arith.constant 0 : index
    %c0_22 = arith.constant 0 : index
    %29 = vector.load %arg9[%c0_21, %c0_22] : memref<64x64xbf16, #tpu.memory_space<vmem>>, vector<64x64xbf16>
    %cst_23 = arith.constant dense<0.000000e+00> : vector<128x64xf32>
    %30 = tpu.matmul %28, %29, %cst_23 {dimension_numbers = #tpu.dot_dimension_numbers<[1], [0], [0], [1], [0, 0, 1, 1], [], []>} : vector<128x64xbf16>, vector<64x64xbf16>, vector<128x64xf32> -> vector<128x64xf32>
    %c0_24 = arith.constant 0 : index
    %c0_25 = arith.constant 0 : index
    %31 = vector.load %arg10[%c0_24, %c0_25] : memref<1x64xf32, #tpu.memory_space<vmem>>, vector<1x64xf32>
    %32 = vector.broadcast %31 : vector<1x64xf32> to vector<128x64xf32>
    %33 = arith.addf %30, %32 : vector<128x64xf32>
    %34 = arith.truncf %33 : vector<128x64xf32> to vector<128x64xbf16>
    %c0_26 = arith.constant 0 : index
    %c0_27 = arith.constant 0 : index
    %35 = vector.load %arg11[%c0_26, %c0_27] : memref<64x32xbf16, #tpu.memory_space<vmem>>, vector<64x32xbf16>
    %cst_28 = arith.constant dense<0.000000e+00> : vector<128x32xf32>
    %36 = tpu.matmul %34, %35, %cst_28 {dimension_numbers = #tpu.dot_dimension_numbers<[1], [0], [0], [1], [0, 0, 1, 1], [], []>} : vector<128x64xbf16>, vector<64x32xbf16>, vector<128x32xf32> -> vector<128x32xf32>
    %c0_29 = arith.constant 0 : index
    %c0_30 = arith.constant 0 : index
    %37 = vector.load %arg12[%c0_29, %c0_30] : memref<1x32xf32, #tpu.memory_space<vmem>>, vector<1x32xf32>
    %38 = vector.broadcast %37 : vector<1x32xf32> to vector<128x32xf32>
    %39 = arith.addf %36, %38 : vector<128x32xf32>
    %cst_31 = arith.constant 0.000000e+00 : f32
    %40 = vector.broadcast %cst_31 : f32 to vector<128x32xf32>
    %41 = arith.maximumf %39, %40 : vector<128x32xf32>
    %42 = arith.truncf %41 : vector<128x32xf32> to vector<128x32xbf16>
    %c0_32 = arith.constant 0 : index
    %c0_33 = arith.constant 0 : index
    %43 = vector.load %arg13[%c0_32, %c0_33] : memref<32x16xbf16, #tpu.memory_space<vmem>>, vector<32x16xbf16>
    %cst_34 = arith.constant dense<0.000000e+00> : vector<128x16xf32>
    %44 = tpu.matmul %42, %43, %cst_34 {dimension_numbers = #tpu.dot_dimension_numbers<[1], [0], [0], [1], [0, 0, 1, 1], [], []>} : vector<128x32xbf16>, vector<32x16xbf16>, vector<128x16xf32> -> vector<128x16xf32>
    %c0_35 = arith.constant 0 : index
    %c0_36 = arith.constant 0 : index
    %45 = vector.load %arg14[%c0_35, %c0_36] : memref<1x16xf32, #tpu.memory_space<vmem>>, vector<1x16xf32>
    %46 = vector.broadcast %45 : vector<1x16xf32> to vector<128x16xf32>
    %47 = arith.addf %44, %46 : vector<128x16xf32>
    %cst_37 = arith.constant 0.000000e+00 : f32
    %48 = vector.broadcast %cst_37 : f32 to vector<128x16xf32>
    %49 = arith.maximumf %47, %48 : vector<128x16xf32>
    %c0_38 = arith.constant 0 : index
    %c0_39 = arith.constant 0 : index
    %50 = vector.load %arg15[%c0_38, %c0_39] : memref<1x16xbf16, #tpu.memory_space<vmem>>, vector<1x16xbf16>
    %51 = arith.truncf %49 : vector<128x16xf32> to vector<128x16xbf16>
    %cst_40 = arith.constant dense<0.000000e+00> : vector<1x128xf32>
    %52 = tpu.matmul %50, %51, %cst_40 {dimension_numbers = #tpu.dot_dimension_numbers<[1], [1], [0], [0], [0, 0, 1, 0], [], []>} : vector<1x16xbf16>, vector<128x16xbf16>, vector<1x128xf32> -> vector<1x128xf32>
    %c0_41 = arith.constant 0 : index
    %c0_42 = arith.constant 0 : index
    %53 = vector.load %arg16[%c0_41, %c0_42] : memref<1x1xf32, #tpu.memory_space<vmem>>, vector<1x1xf32>
    %54 = vector.broadcast %53 : vector<1x1xf32> to vector<1x128xf32>
    %55 = arith.addf %52, %54 : vector<1x128xf32>
    %c0_43 = arith.constant 0 : index
    %c0_44 = arith.constant 0 : index
    %56 = vector.load %arg17[%c0_43, %c0_44] : memref<1x128xf32, #tpu.memory_space<vmem>>, vector<1x128xf32>
    tpu.vector_store %arg17[%c0_43, %c0_44], %55 {strides = array<i32>} : memref<1x128xf32, #tpu.memory_space<vmem>>, vector<1x128xf32>,
    return
  }
  func.func @transform_0(%arg0: i32) -> (i32, i32) {
    %c0_i32 = arith.constant 0 : i32
    %c0_i32_0 = arith.constant 0 : i32
    return %arg0, %c0_i32 : i32, i32
  }
  func.func @transform_1(%arg0: i32) -> (i32, i32) {
    %c0_i32 = arith.constant 0 : i32
    %c0_i32_0 = arith.constant 0 : i32
    return %arg0, %c0_i32 : i32, i32
  }
  func.func @transform_2(%arg0: i32) -> (i32, i32) {
    %c0_i32 = arith.constant 0 : i32
    %c0_i32_0 = arith.constant 0 : i32
    return %arg0, %c0_i32 : i32, i32
  }
  func.func @transform_3(%arg0: i32) -> (i32, i32) {
    %c0_i32 = arith.constant 0 : i32
    %c0_i32_0 = arith.constant 0 : i32
    return %arg0, %c0_i32 : i32, i32
  }
  func.func @transform_4(%arg0: i32) -> (i32, i32) {
    %c0_i32 = arith.constant 0 : i32
    %c0_i32_0 = arith.constant 0 : i32
    return %arg0, %c0_i32 : i32, i32
  }
  func.func @transform_5(%arg0: i32) -> (i32, i32) {
    %c0_i32 = arith.constant 0 : i32
    %c0_i32_0 = arith.constant 0 : i32
    %c0_i32_1 = arith.constant 0 : i32
    return %c0_i32, %c0_i32_0 : i32, i32
  }
  func.func @transform_6(%arg0: i32) -> (i32, i32) {
    %c0_i32 = arith.constant 0 : i32
    %c0_i32_0 = arith.constant 0 : i32
    %c0_i32_1 = arith.constant 0 : i32
    return %c0_i32, %c0_i32_0 : i32, i32
  }
  func.func @transform_7(%arg0: i32) -> (i32, i32) {
    %c0_i32 = arith.constant 0 : i32
    %c0_i32_0 = arith.constant 0 : i32
    %c0_i32_1 = arith.constant 0 : i32
    return %c0_i32, %c0_i32_0 : i32, i32
  }
  func.func @transform_8(%arg0: i32) -> (i32, i32) {
    %c0_i32 = arith.constant 0 : i32
    %c0_i32_0 = arith.constant 0 : i32
    %c0_i32_1 = arith.constant 0 : i32
    return %c0_i32, %c0_i32_0 : i32, i32
  }
  func.func @transform_9(%arg0: i32) -> (i32, i32) {
    %c0_i32 = arith.constant 0 : i32
    %c0_i32_0 = arith.constant 0 : i32
    %c0_i32_1 = arith.constant 0 : i32
    return %c0_i32, %c0_i32_0 : i32, i32
  }
  func.func @transform_10(%arg0: i32) -> (i32, i32) {
    %c0_i32 = arith.constant 0 : i32
    %c0_i32_0 = arith.constant 0 : i32
    %c0_i32_1 = arith.constant 0 : i32
    return %c0_i32, %c0_i32_0 : i32, i32
  }
  func.func @transform_11(%arg0: i32) -> (i32, i32) {
    %c0_i32 = arith.constant 0 : i32
    %c0_i32_0 = arith.constant 0 : i32
    %c0_i32_1 = arith.constant 0 : i32
    return %c0_i32, %c0_i32_0 : i32, i32
  }
  func.func @transform_12(%arg0: i32) -> (i32, i32) {
    %c0_i32 = arith.constant 0 : i32
    %c0_i32_0 = arith.constant 0 : i32
    %c0_i32_1 = arith.constant 0 : i32
    return %c0_i32, %c0_i32_0 : i32, i32
  }
  func.func @transform_13(%arg0: i32) -> (i32, i32) {
    %c0_i32 = arith.constant 0 : i32
    %c0_i32_0 = arith.constant 0 : i32
    %c0_i32_1 = arith.constant 0 : i32
    return %c0_i32, %c0_i32_0 : i32, i32
  }
  func.func @transform_14(%arg0: i32) -> (i32, i32) {
    %c0_i32 = arith.constant 0 : i32
    %c0_i32_0 = arith.constant 0 : i32
    %c0_i32_1 = arith.constant 0 : i32
    return %c0_i32, %c0_i32_0 : i32, i32
  }
  func.func @transform_15(%arg0: i32) -> (i32, i32) {
    %c0_i32 = arith.constant 0 : i32
    %c0_i32_0 = arith.constant 0 : i32
    %c0_i32_1 = arith.constant 0 : i32
    return %c0_i32, %c0_i32_0 : i32, i32
  }
  func.func @transform_16(%arg0: i32) -> (i32, i32) {
    %c0_i32 = arith.constant 0 : i32
    %c0_i32_0 = arith.constant 0 : i32
    return %c0_i32, %arg0 : i32, i32
  }
}

</mosaic_0001>

<bundles_post_ra>
// kernel: tpu_custom_call.1
= control target key start
LH: loop header
LB: loop body
LE: loop exit
PB: predicated region body
PF: predicated region fallthrough
CT: control target
= control target key end

     0   :  { %s2718_s0 = inlined_call_operand.vmem [shape: f32[384,32], index: 0, kind: input, shape index: {}]   ;;  %s2719_s1 = inlined_call_operand.vmem [shape: f32[384,32], index: 1, kind: input, shape index: {}]   ;;  %s2720_s2 = inlined_call_operand.vmem [shape: f32[384,32], index: 2, kind: input, shape index: {}]   ;;  %s2721_s3 = inlined_call_operand.vmem [shape: f32[384,32], index: 3, kind: input, shape index: {}]   ;;  %s2722_s4 = inlined_call_operand.vmem [shape: f32[384,32], index: 4, kind: input, shape index: {}]   ;;  %s2723_s5 = inlined_call_operand.vmem [shape: bf16[32,64], index: 5, kind: input, shape index: {}]   ;;  %s2724_s6 = inlined_call_operand.vmem [shape: bf16[32,64], index: 6, kind: input, shape index: {}]   ;;  %s2725_s7 = inlined_call_operand.vmem [shape: f32[1,64], index: 7, kind: input, shape index: {}]   ;;  %s2726_s8 = inlined_call_operand.vmem [shape: bf16[64,64], index: 8, kind: input, shape index: {}]   ;;  %s2727_s9 = inlined_call_operand.vmem [shape: f32[1,64], index: 9, kind: input, shape index: {}]   ;;  %s2728_s10 = inlined_call_operand.vmem [shape: bf16[64,32], index: 10, kind: input, shape index: {}]   ;;  %s2729_s11 = inlined_call_operand.vmem [shape: f32[1,32], index: 11, kind: input, shape index: {}]   ;;  %s2730_s12 = inlined_call_operand.vmem [shape: bf16[32,16], index: 12, kind: input, shape index: {}]   ;;  %s2731_s13 = inlined_call_operand.vmem [shape: f32[1,16], index: 13, kind: input, shape index: {}]   ;;  %s2732_s14 = inlined_call_operand.vmem [shape: bf16[1,16], index: 14, kind: input, shape index: {}]   ;;  %s2733_s15 = inlined_call_operand.<no memory space> [shape: f32[1,1], index: 15, kind: input, shape index: {}]   ;;  %s2734_s16 = inlined_call_operand.hbm [shape: f32[1,384], index: 16, kind: output, shape index: {}]  }
   0x1   :  { %2736 = sst [smem:[#allocation8_spill]] %s2718_s0  ;;  %v21_v0 = vstv %s2733_s15 }
   0x2   :  { %2737 = sst [smem:[#allocation9_spill]] %s2719_s1  ;;  %22 = vst [vmem:[#allocation2] sm:$0x1] %v21_v0 }
   0x3   :  { %2738 = sst [smem:[#allocation10_spill]] %s2724_s6 }
   0x4   :  { %23 = vsyncpa [#allocation4], 0 }
   0x5   :  { %25 = vsyncpa [#allocation4 + $0x1], 0  ;;  %s2363_s23 = smov 0   ;;  %s2365_s24 = smov 0  }
   0x6   :  { %s2367_s25 = smov 0   ;;  %s2369_s26 = smov 0  }
   0x7 LB: > { %2739 = sst [smem:[#allocation6_spill]] %s2265_s25  ;;  %s1858_s15 = sadd.s32 4294967295, %s2269_s26   ;;  %s2269_s26 = sphi %s2369_s26, %s2750_s26   ;;  %s2265_s25 = sphi %s2367_s25, %s2747_s25   ;;  %s2261_s24 = sphi %s2365_s24, %s2749_s24   ;;  %s2257_s23 = sphi %s2363_s23, %s2748_s23  }
   0x8   : > { %s1859_s27 = sadd.s32 4294967294, %s2269_s26   ;;  %s2386_s28 = sadd.s32 1, %s2269_s26  }
   0x9   : > { %s399_s29 = sadd.s32 1, %s2265_s25  ;;  %s396_s30 = ssub.s32 %s2269_s26, %s2386_s28 }
   0xa   : > { %p409_p0 = scmp.ne.s32.totalorder %s2265_s25, %s2261_s24  ;;  %p397_p1 = scmp.eq.s32.totalorder %s396_s30, 0 }
   0xb   : > { %p410_p2 = scmp.eq.s32.totalorder %s1858_s15, 2  ;;  %p415_p3 = scmp.ne.s32.totalorder %s2261_s24, %s2257_s23 }
   0xc   : > { %p416_p4 = scmp.eq.s32.totalorder %s1859_s27, 2  ;;  %p1862_p7 = scmp.ge.s32.totalorder %s2269_s26, 1 }
   0xd   : > { %s2396_s0 = scalar_select %p397_p1, %s2265_s25, %s399_s29  }
   0xe   : > { %p2398_p5 = por %p410_p2, %p409_p0  ;;  %p2402_p6 = por %p416_p4, %p415_p3 }
   0xf   : > { %2740 = sst [smem:[#allocation7_spill]] %s2396_s0  ;;  %p512_p8 = scmp.lt.s32.totalorder %s2269_s26, 4 }
  0x11   : > { %p513_p9 = pnand %p1862_p7, %p512_p8 }
  0x12   : > { %s2743_s6 = sld [smem:[#allocation10_spill]] (!%p513_p9)  ;;  %s2411_s21 = sshll.u32 (!%p513_p9), %s1858_s15, 4  ;;  %v2195_v3 = vld [vmem:[%s2723_s5] sm:$0xff] (!%p513_p9)   ;;  %v2429_v5 = vld [vmem:[%s2726_s8 + $0x8] sm:$0xff] (!%p513_p9)   ;;  %vm840_vm0 = vcmask (!%p513_p9), 261120   ;;  %v2461_v16 = vld [vmem:[%s2726_s8 + $0x10] sm:$0xff] (!%p513_p9)  }
  0x13   : > { %516 = sbr.rel (%p513_p9) target bundleno = 1243 (0x4db), region = 84  ;;  %p582_p10 = scmp.lt.s32.totalorder (!%p513_p9), %s2411_s21, 47  ;;  %v2424_v4 = vld [vmem:[%s2726_s8] sm:$0xff] (!%p513_p9)   ;;  %v2196_v15 = vld [vmem:[%s2723_s5 + $0x8] sm:$0xff] (!%p513_p9)   ;;  %vm1181_vm1 = vcmask (!%p513_p9), 523264   ;;  %vm2272_vm2 = vmmov (!%p513_p9), 0  }
  0x14   : > { %2126 = vmatprep.subr.bf16.mxu1 (!%p513_p9), %v2424_v4  ;;  %s2745_s1 = sld [smem:[#allocation9_spill]] (!%p513_p9)  ;;  %vm1674_vm3 = vcmask (!%p513_p9), 130048   ;;  %s2676_s20 = scalar_lea.hbm (!%p513_p9), %s2734_s16, %s2411_s21 }
  0x15   : > { %2130 = vmatpush3.bf16.msra.mxu1 (!%p513_p9), %v2424_v4 }
  0x16   : > { %2127 = vmatprep.subr.bf16.mxu1 (!%p513_p9), %v2429_v5 }
  0x18   : > { %v2193_v1 = vld [vmem:[%s2743_s6] sm:$0xff] (!%p513_p9)   ;;  %v2194_v2 = vld [vmem:[%s2743_s6 + $0x8] sm:$0xff] (!%p513_p9)   ;;  %s2744_s6 = sld [smem:[#allocation8_spill]] (!%p513_p9) }
  0x19   : > { %1998 = vmatprep.subr.bf16.mxu0 (!%p513_p9), %v2193_v1  ;;  %2131 = vmatpush3.bf16.msra.mxu1 (!%p513_p9), %v2429_v5 }
  0x1a   : > { %1999 = vmatpush3.bf16.msra.mxu0 %v2193_v1  ;;  %s583_s29 = scalar_select %p582_p10, %s2411_s21, 47  ;;  %2128 = vmatprep.subr.bf16.mxu1 %v2461_v16 }
  0x1b   : > { %2000 = vmatprep.subr.bf16.mxu0 %v2194_v2 }
  0x1c   : > { %s1864_s15 = sshll.u32 %s583_s29, 3 }
  0x1d   : > { %s2435_s0 = scalar_lea.vmem %s2722_s4, %s1864_s15  ;;  %s2450_s22 = scalar_lea.vmem %s2745_s1, %s1864_s15  ;;  %2132 = vmatpush3.bf16.msra.mxu1 %v2461_v16 }
  0x1e   : > { %2001 = vmatpush3.bf16.msra.mxu0 %v2194_v2  ;;  %v788_v6 = vld [vmem:[%s2435_s0] sm:$0xff]  ;;  %v789_v7 = vld [vmem:[%s2435_s0 + $0x8] sm:$0xff]  ;;  %v790_v8 = vld [vmem:[%s2435_s0 + $0x10] sm:$0xff]  ;;  %s2445_s30 = scalar_lea.vmem %s2744_s6, %s1864_s15  ;;  %s2467_s1 = scalar_lea.vmem %s2720_s2, %s1864_s15 }
  0x1f   : > { %2018 = vmatprep.subr.bf16.mxu0 %v2195_v3  ;;  %v816_v9 = vpack.c.bf16 %v789_v7, %v788_v6  ;;  %v791_v10 = vld [vmem:[%s2435_s0 + $0x18] sm:$0xff]  ;;  %v792_v11 = vld [vmem:[%s2435_s0 + $0x20] sm:$0xff]  ;;  %v793_v12 = vld [vmem:[%s2435_s0 + $0x28] sm:$0xff]  ;;  %s2474_s29 = scalar_lea.vmem %s2721_s3, %s1864_s15 }
  0x20   : > { %v817_v13 = vpack.c.bf16 %v791_v10, %v790_v8  ;;  %v818_v14 = vpack.c.bf16 %v793_v12, %v792_v11  ;;  %v612_v17 = vld [vmem:[%s2445_s30] sm:$0xff]  ;;  %v613_v18 = vld [vmem:[%s2445_s30 + $0x8] sm:$0xff]  ;;  %v794_v20 = vld [vmem:[%s2435_s0 + $0x30] sm:$0xff] }
  0x21   : > { %2002 = vmatprep.mubr.msk.bf16.mxu0 %vm840_vm0, %v816_v9  ;;  %v644_v19 = vld [vmem:[%s2450_s22] sm:$0xff]  ;;  %v795_v21 = vld [vmem:[%s2435_s0 + $0x38] sm:$0xff]  ;;  %v645_v22 = vld [vmem:[%s2450_s22 + $0x8] sm:$0xff]  ;;  %v628_v26 = vmul.f32 0.032058604, %v612_v17 }
  0x22   : > { %2003 = vmatmul.mubr.msk.bf16.vlgmr.msra.gmra.mrb[0].mxu0 %vm840_vm0, %v817_v13  ;;  %v796_v23 = vld [vmem:[%s2435_s0 + $0x40] sm:$0xff]  ;;  %v797_v24 = vld [vmem:[%s2435_s0 + $0x48] sm:$0xff]  ;;  %v629_v27 = vmul.f32 0.032058604, %v613_v18  ;;  %v819_v30 = vpack.c.bf16 %v795_v21, %v794_v20  ;;  %v660_v31 = vmul.f32 0.087144315, %v644_v19 }
  0x23   : > { %2019 = vmatpush3.bf16.msra.mxu0 %v2195_v3  ;;  %2006 = vmatprep.mubr.msk.bf16.mxu0 %vm840_vm0, %v818_v14  ;;  %v692_v25 = vld [vmem:[%s2467_s1] sm:$0xff]  ;;  %v693_v28 = vld [vmem:[%s2467_s1 + $0x8] sm:$0xff]  ;;  %v661_v32 = vmul.f32 0.087144315, %v645_v22  ;;  %v614_v34 = vld [vmem:[%s2445_s30 + $0x10] sm:$0xff]  ;;  %v820_v35 = vpack.c.bf16 %v797_v24, %v796_v23 }
  0x24   : > { %2020 = vmatprep.subr.bf16.mxu0 %v2196_v15  ;;  %v740_v29 = vld [vmem:[%s2474_s29] sm:$0xff]  ;;  %v741_v33 = vld [vmem:[%s2474_s29 + $0x8] sm:$0xff]  ;;  %v708_v36 = vmul.f32 0.23688282, %v692_v25  ;;  %v615_v37 = vld [vmem:[%s2445_s30 + $0x18] sm:$0xff]  ;;  %v676_v51 = vadd.f32 %v660_v31, %v628_v26 }
  0x25   : > { %v646_v38 = vld [vmem:[%s2450_s22 + $0x10] sm:$0xff]  ;;  %v799_v40 = vld [vmem:[%s2435_s0 + $0x58] sm:$0xff]  ;;  %v709_v41 = vmul.f32 0.23688282, %v693_v28  ;;  %v756_v42 = vmul.f32 0.6439143, %v740_v29  ;;  %v677_v52 = vadd.f32 %v661_v32, %v629_v27 }
  0x26   : > { %v798_v39 = vld [vmem:[%s2435_s0 + $0x50] sm:$0xff]  ;;  %v647_v43 = vld [vmem:[%s2450_s22 + $0x18] sm:$0xff]  ;;  %v757_v45 = vmul.f32 0.6439143, %v741_v33  ;;  %v630_v46 = vmul.f32 0.032058604, %v614_v34  ;;  %v724_v8 = vadd.f32 %v708_v36, %v676_v51 }
  0x27   : > { %2021 = vmatpush3.bf16.msra.mxu0 %v2196_v15  ;;  %v694_v44 = vld [vmem:[%s2467_s1 + $0x10] sm:$0xff]  ;;  %v695_v47 = vld [vmem:[%s2467_s1 + $0x18] sm:$0xff]  ;;  %v800_v49 = vld [vmem:[%s2435_s0 + $0x60] sm:$0xff]  ;;  %v631_v53 = vmul.f32 0.032058604, %v615_v37  ;;  %v821_v1 = vpack.c.bf16 %v799_v40, %v798_v39  ;;  %v725_v9 = vadd.f32 %v709_v41, %v677_v52 }
  0x28   : > { %2038 = vmatprep.subr.bf16.mxu0 %v2424_v4  ;;  %v742_v48 = vld [vmem:[%s2474_s29 + $0x10] sm:$0xff]  ;;  %v801_v50 = vld [vmem:[%s2435_s0 + $0x68] sm:$0xff]  ;;  %v662_v54 = vmul.f32 0.087144315, %v646_v38  ;;  %v616_v55 = vld [vmem:[%s2445_s30 + $0x20] sm:$0xff]  ;;  %v772_v33 = vadd.f32 %v756_v42, %v724_v8 }
  0x29   : > { %v648_v56 = vld [vmem:[%s2450_s22 + $0x20] sm:$0xff]  ;;  %v663_v57 = vmul.f32 0.087144315, %v647_v43  ;;  %v710_v58 = vmul.f32 0.23688282, %v694_v44  ;;  %v743_v59 = vld [vmem:[%s2474_s29 + $0x18] sm:$0xff]  ;;  %v822_v14 = vpack.c.bf16 %v801_v50, %v800_v49  ;;  %v773_v34 = vadd.f32 %v757_v45, %v725_v9 }
  0x2a   : > { %2007 = vmatmul.mubr.msk.bf16.gmra.mrb[4].mxu0 %vm840_vm0, %v819_v30  ;;  %v617_v60 = vld [vmem:[%s2445_s30 + $0x28] sm:$0xff]  ;;  %v711_v61 = vmul.f32 0.23688282, %v695_v47  ;;  %v2509_v62 = vmul.f32 0.6439143, %v742_v48  ;;  %v696_v0 = vld [vmem:[%s2467_s1 + $0x20] sm:$0xff]  ;;  %v678_v20 = vadd.f32 %v662_v54, %v630_v46 }
  0x2b   : > { %2010 = vmatprep.mubr.msk.bf16.mxu0 %vm840_vm0, %v820_v35  ;;  %v649_v63 = vld [vmem:[%s2450_s22 + $0x28] sm:$0xff]  ;;  %v632_v2 = vmul.f32 0.032058604, %v616_v55  ;;  %v664_v3 = vmul.f32 0.087144315, %v648_v56  ;;  %v744_v7 = vld [vmem:[%s2474_s29 + $0x20] sm:$0xff]  ;;  %v679_v21 = vadd.f32 %v663_v57, %v631_v53  ;;  %v804_v56 = vpack.c.bf16 %v773_v34, %v772_v33 }
  0x2c   : > { %v697_v6 = vld [vmem:[%s2467_s1 + $0x28] sm:$0xff]  ;;  %v759_v10 = vmul.f32 0.6439143, %v743_v59  ;;  %v633_v11 = vmul.f32 0.032058604, %v617_v60  ;;  %v618_v13 = vld [vmem:[%s2445_s30 + $0x30] sm:$0xff]  ;;  %v726_v46 = vadd.f32 %v710_v58, %v678_v20 }
  0x2d   : > { %v745_v12 = vld [vmem:[%s2474_s29 + $0x28] sm:$0xff]  ;;  %v665_v15 = vmul.f32 0.087144315, %v649_v63  ;;  %v712_v17 = vmul.f32 0.23688282, %v696_v0  ;;  %v619_v18 = vld [vmem:[%s2445_s30 + $0x38] sm:$0xff]  ;;  %v680_v28 = vadd.f32 %v664_v3, %v632_v2  ;;  %v727_v47 = vadd.f32 %v711_v61, %v679_v21 }
  0x2e   : > { %v650_v19 = vld [vmem:[%s2450_s22 + $0x30] sm:$0xff]  ;;  %v713_v22 = vmul.f32 0.23688282, %v697_v6  ;;  %v760_v23 = vmul.f32 0.6439143, %v744_v7  ;;  %v651_v24 = vld [vmem:[%s2450_s22 + $0x38] sm:$0xff]  ;;  %v774_v6 = vadd.f32 %v2509_v62, %v726_v46 }
  0x2f   : > { %v698_v25 = vld [vmem:[%s2467_s1 + $0x30] sm:$0xff]  ;;  %v803_v27 = vld [vmem:[%s2435_s0 + $0x78] sm:$0xff]  ;;  %v761_v29 = vmul.f32 0.6439143, %v745_v12  ;;  %v634_v30 = vmul.f32 0.032058604, %v618_v13  ;;  %v681_v39 = vadd.f32 %v665_v15, %v633_v11  ;;  %v728_v50 = vadd.f32 %v712_v17, %v680_v28 }
  0x30   : > { %v802_v26 = vld [vmem:[%s2435_s0 + $0x70] sm:$0xff]  ;;  %v699_v31 = vld [vmem:[%s2467_s1 + $0x38] sm:$0xff]  ;;  %v635_v35 = vmul.f32 0.032058604, %v619_v18  ;;  %v666_v36 = vmul.f32 0.087144315, %v650_v19  ;;  %v775_v7 = vadd.f32 %v759_v10, %v727_v47 }
  0x31   : > { %v746_v32 = vld [vmem:[%s2474_s29 + $0x30] sm:$0xff]  ;;  %v620_v37 = vld [vmem:[%s2445_s30 + $0x40] sm:$0xff]  ;;  %v621_v38 = vld [vmem:[%s2445_s30 + $0x48] sm:$0xff]  ;;  %v667_v40 = vmul.f32 0.087144315, %v651_v24  ;;  %v823_v55 = vpack.c.bf16 %v803_v27, %v802_v26  ;;  %v729_v61 = vadd.f32 %v713_v22, %v681_v39  ;;  %v776_v13 = vadd.f32 %v760_v23, %v728_v50  ;;  %s579_s0 = sand.u32 1, %s2261_s24  }
  0x32   : > { %2011 = vmatmul.mubr.msk.bf16.gmra.mrb[8].mxu0 %vm840_vm0, %v821_v1  ;;  %v714_v41 = vmul.f32 0.23688282, %v698_v25  ;;  %v652_v43 = vld [vmem:[%s2450_s22 + $0x40] sm:$0xff]  ;;  %v653_v44 = vld [vmem:[%s2450_s22 + $0x48] sm:$0xff]  ;;  %v715_v42 = vmul.f32 0.23688282, %v699_v31  ;;  %v682_v63 = vadd.f32 %v666_v36, %v634_v30  ;;  %v805_v33 = vpack.c.bf16 %v775_v7, %v774_v6 }
  0x33   : > { %2014 = vmatprep.mubr.msk.bf16.mxu0 %vm840_vm0, %v822_v14  ;;  %v747_v45 = vld [vmem:[%s2474_s29 + $0x38] sm:$0xff]  ;;  %v762_v48 = vmul.f32 0.6439143, %v746_v32  ;;  %v700_v49 = vld [vmem:[%s2467_s1 + $0x40] sm:$0xff]  ;;  %v636_v51 = vmul.f32 0.032058604, %v620_v37  ;;  %v683_v14 = vadd.f32 %v667_v40, %v635_v35  ;;  %v777_v23 = vadd.f32 %v761_v29, %v729_v61 }
  0x34   : > { %v637_v52 = vmul.f32 0.032058604, %v621_v38  ;;  %v701_v53 = vld [vmem:[%s2467_s1 + $0x48] sm:$0xff]  ;;  %v748_v54 = vld [vmem:[%s2474_s29 + $0x40] sm:$0xff]  ;;  %v668_v57 = vmul.f32 0.087144315, %v652_v43  ;;  %v730_v24 = vadd.f32 %v714_v41, %v682_v63 }
  0x35   : > { %v669_v59 = vmul.f32 0.087144315, %v653_v44  ;;  %v749_v58 = vld [vmem:[%s2474_s29 + $0x48] sm:$0xff]  ;;  %v622_v60 = vld [vmem:[%s2445_s30 + $0x50] sm:$0xff]  ;;  %v763_v0 = vmul.f32 0.6439143, %v747_v45  ;;  %v731_v38 = vadd.f32 %v715_v42, %v683_v14  ;;  %v806_v46 = vpack.c.bf16 %v777_v23, %v776_v13 }
  0x36   : > { %v716_v1 = vmul.f32 0.23688282, %v700_v49  ;;  %v623_v2 = vld [vmem:[%s2445_s30 + $0x58] sm:$0xff]  ;;  %v654_v3 = vld [vmem:[%s2450_s22 + $0x50] sm:$0xff]  ;;  %v717_v8 = vmul.f32 0.23688282, %v701_v53  ;;  %v684_v19 = vadd.f32 %v668_v57, %v636_v51  ;;  %v778_v47 = vadd.f32 %v762_v48, %v730_v24 }
  0x37   : > { %v764_v9 = vmul.f32 0.6439143, %v748_v54  ;;  %v655_v11 = vld [vmem:[%s2450_s22 + $0x58] sm:$0xff]  ;;  %v702_v12 = vld [vmem:[%s2467_s1 + $0x50] sm:$0xff]  ;;  %v765_v15 = vmul.f32 0.6439143, %v749_v58  ;;  %v685_v62 = vadd.f32 %v669_v59, %v637_v52  ;;  %v779_v59 = vadd.f32 %v763_v0, %v731_v38 }
  0x38   : > { %v638_v17 = vmul.f32 0.032058604, %v622_v60  ;;  %v703_v18 = vld [vmem:[%s2467_s1 + $0x58] sm:$0xff]  ;;  %v639_v20 = vmul.f32 0.032058604, %v623_v2  ;;  %v750_v21 = vld [vmem:[%s2474_s29 + $0x50] sm:$0xff]  ;;  %v732_v39 = vadd.f32 %v716_v1, %v684_v19 }
  0x39   : > { %v670_v10 = vmul.f32 0.087144315, %v654_v3  ;;  %v624_v22 = vld [vmem:[%s2445_s30 + $0x60] sm:$0xff]  ;;  %v671_v25 = vmul.f32 0.087144315, %v655_v11  ;;  %v625_v27 = vld [vmem:[%s2445_s30 + $0x68] sm:$0xff]  ;;  %v733_v29 = vadd.f32 %v717_v8, %v685_v62  ;;  %v807_v7 = vpack.c.bf16 %v779_v59, %v778_v47 }
  0x3a   : > { %2015 = vmatmul.mubr.msk.bf16.gmra.mrb[12].mxu0 %vm840_vm0, %v823_v55  ;;  %v718_v26 = vmul.f32 0.23688282, %v702_v12  ;;  %v719_v28 = vmul.f32 0.23688282, %v703_v18  ;;  %v751_v30 = vld [vmem:[%s2474_s29 + $0x58] sm:$0xff]  ;;  %v656_v31 = vld [vmem:[%s2450_s22 + $0x60] sm:$0xff]  ;;  %v780_v58 = vadd.f32 %v764_v9, %v732_v39 }
  0x3b   : > { %2022 = vmatprep.mubr.msk.bf16.mxu0 %vm840_vm0, %v804_v56  ;;  %v657_v32 = vld [vmem:[%s2450_s22 + $0x68] sm:$0xff]  ;;  %v766_v34 = vmul.f32 0.6439143, %v750_v21  ;;  %v640_v35 = vmul.f32 0.032058604, %v624_v22  ;;  %v704_v36 = vld [vmem:[%s2467_s1 + $0x60] sm:$0xff]  ;;  %v686_v51 = vadd.f32 %v670_v10, %v638_v17  ;;  %v687_v55 = vadd.f32 %v671_v25, %v639_v20 }
  0x3c   : > { %v705_v37 = vld [vmem:[%s2467_s1 + $0x68] sm:$0xff]  ;;  %v641_v40 = vmul.f32 0.032058604, %v625_v27  ;;  %v626_v41 = vld [vmem:[%s2445_s30 + $0x70] sm:$0xff]  ;;  %v627_v43 = vld [vmem:[%s2445_s30 + $0x78] sm:$0xff]  ;;  %v781_v60 = vadd.f32 %v765_v15, %v733_v29  ;;  %s580_s30 = scalar_lea.vmem [#allocation3], %s579_s0 }
  0x3d   : > { %v658_v44 = vld [vmem:[%s2450_s22 + $0x70] sm:$0xff]  ;;  %v672_v45 = vmul.f32 0.087144315, %v656_v31  ;;  %v673_v49 = vmul.f32 0.087144315, %v657_v32  ;;  %v659_v50 = vld [vmem:[%s2450_s22 + $0x78] sm:$0xff]  ;;  %v734_v3 = vadd.f32 %v718_v26, %v686_v51  ;;  %v735_v6 = vadd.f32 %v719_v28, %v687_v55 }
  0x3e   : > { %v767_v52 = vmul.f32 0.6439143, %v751_v30  ;;  %v720_v53 = vmul.f32 0.23688282, %v704_v36  ;;  %v721_v54 = vmul.f32 0.23688282, %v705_v37  ;;  %v808_v8 = vpack.c.bf16 %v781_v60, %v780_v58 }
  0x3f   : > { %v642_v56 = vmul.f32 0.032058604, %v626_v41  ;;  %v643_v42 = vmul.f32 0.032058604, %v627_v43  ;;  %v674_v57 = vmul.f32 0.087144315, %v658_v44  ;;  %v688_v1 = vadd.f32 %v672_v45, %v640_v35 }
  0x40   : > { %v752_v61 = vld [vmem:[%s2474_s29 + $0x60] sm:$0xff]  ;;  %v753_v48 = vld [vmem:[%s2474_s29 + $0x68] sm:$0xff]  ;;  %v675_v63 = vmul.f32 0.087144315, %v659_v50  ;;  %v689_v2 = vadd.f32 %v673_v49, %v641_v40  ;;  %v706_v13 = vld [vmem:[%s2467_s1 + $0x70] sm:$0xff]  ;;  %v782_v15 = vadd.f32 %v766_v34, %v734_v3  ;;  %s1756_s22 = sshll.u32 %s580_s30, 4  ;;  %s2678_s22 = int_to_ptr.vmem [resolvable:$true] %s1756_s22 }
  0x41   : > { %v736_v0 = vadd.f32 %v720_v53, %v688_v1  ;;  %v768_v11 = vmul.f32 0.6439143, %v752_v61  ;;  %v769_v12 = vmul.f32 0.6439143, %v753_v48  ;;  %v707_v14 = vld [vmem:[%s2467_s1 + $0x78] sm:$0xff]  ;;  %v690_v17 = vadd.f32 %v674_v57, %v642_v56  ;;  %v754_v21 = vld [vmem:[%s2474_s29 + $0x70] sm:$0xff] }
  0x42   : > { %2023 = vmatmul.mubr.msk.bf16.vlgmr.msra.gmra.mrb[0].mxu0 %vm840_vm0, %v805_v33  ;;  %v737_v9 = vadd.f32 %v721_v54, %v689_v2  ;;  %v691_v18 = vadd.f32 %v675_v63, %v643_v42  ;;  %v722_v19 = vmul.f32 0.23688282, %v706_v13  ;;  %v723_v62 = vmul.f32 0.23688282, %v707_v14  ;;  %v755_v22 = vld [vmem:[%s2474_s29 + $0x78] sm:$0xff]  ;;  %v2202_v2 = vld [vmem:[%s2728_s10 + $0x8] sm:$0xff]  }
  0x43   : > { %2026 = vmatprep.mubr.msk.bf16.mxu0 %vm840_vm0, %v806_v46  ;;  %2039 = vmatpush3.bf16.msra.mxu0 %v2424_v4  ;;  %v783_v4 = vadd.f32 %v767_v52, %v735_v6  ;;  %v784_v20 = vadd.f32 %v768_v11, %v736_v0  ;;  %v770_v25 = vmul.f32 0.6439143, %v754_v21  ;;  %v771_v26 = vmul.f32 0.6439143, %v755_v22  ;;  %v2200_v32 = vld [vmem:[%s2726_s8 + $0x18] sm:$0xff]   ;;  %s1744_s27 = scalar_lea.sflag [#allocation4], %s579_s0 }
  0x44   : > { %2040 = vmatprep.subr.bf16.mxu0 %v2429_v5  ;;  %v785_v10 = vadd.f32 %v769_v12, %v737_v9  ;;  %v739_v24 = vadd.f32 %v723_v62, %v691_v18  ;;  %2129 = vmatprep.subr.bf16.mxu1 %v2200_v32  ;;  %v2584_v33 = vld [vmem:[%s2725_s7] ss:$0 sm:$0xff]  ;;  %v2203_v12 = vld [vmem:[%s2728_s10 + $0x10] sm:$0xff]   ;;  %s2207_s25 = scalar_lea.vmem %s2678_s22, 16  ;;  %s2274_s29 = smov [#allocation3]  }
  0x45   : > { %v809_v23 = vpack.c.bf16 %v783_v4, %v782_v15  ;;  %2133 = vmatpush3.bf16.msra.mxu1 %v2200_v32  ;;  %p2208_p11 = scmp.ne.s32.totalorder %s2678_s22, %s2207_s25  ;;  %s2211_s1 = sshll.u32 %s2274_s29, 4  ;;  %s2212_s1 = int_to_ptr.vmem [resolvable:$false] %s2211_s1 }
  0x46   : > { %v810_v27 = vpack.c.bf16 %v785_v10, %v784_v20  ;;  %v787_v30 = vadd.f32 %v771_v26, %v739_v24  ;;  %s2213_s15 = scalar_lea.vmem %s2212_s1, 32  ;;  %p2214_p0 = scmp.lt.s32.totalorder %s2678_s22, %s2212_s1 }
  0x47   : > { %2041 = vmatpush3.bf16.msra.mxu0 %v2429_v5  ;;  %v738_v5 = vadd.f32 %v722_v19, %v690_v17  ;;  %p2209_p12 = pnand %p2208_p11, %p2398_p5  ;;  %p2215_p1 = scmp.lt.s32.totalorder %s2213_s15, %s2207_s25 }
  0x48   : > { %2042 = vmatprep.subr.bf16.mxu0 %v2461_v16 }
  0x49   : > { %v786_v28 = vadd.f32 %v770_v25, %v738_v5  ;;  %p2210_p13 = pneg %p2209_p12  ;;  %p2216_p2 = por %p2215_p1, %p2214_p0 }
  0x4a   : > { %2027 = vmatmul.mubr.msk.bf16.gmra.mrb[4].mxu0 %vm840_vm0, %v807_v7 }
  0x4b   : > { %2030 = vmatprep.mubr.msk.bf16.mxu0 %vm840_vm0, %v808_v8  ;;  %2043 = vmatpush3.bf16.msra.mxu0 %v2461_v16  ;;  %v811_v31 = vpack.c.bf16 %v787_v30, %v786_v28  ;;  %v2201_v16 = vld [vmem:[%s2728_s10] sm:$0xff]   ;;  %v2204_v28 = vld [vmem:[%s2728_s10 + $0x18] sm:$0xff]   ;;  %p2217_p3 = pnand %p2216_p2, %p2210_p13 }
  0x4c   : > { %2044 = vmatprep.subr.bf16.mxu0 %v2200_v32  ;;  %2062 = vmatprep.subr.bf16.mxu1 %v2201_v16 }
  0x4f   : > { %2045 = vmatpush3.bf16.msra.mxu0 %v2200_v32 }
  0x52   : > { %2031 = vmatmul.mubr.msk.bf16.gmra.mrb[8].mxu0 %vm840_vm0, %v809_v23 }
  0x53   : > { %2034 = vmatprep.mubr.msk.bf16.mxu0 %vm840_vm0, %v810_v27 }
  0x5a   : > { %2035 = vmatmul.mubr.msk.bf16.gmra.mrb[12].mxu0 %vm840_vm0, %v811_v31  ;;  %v1894_v31 = vld [vmem:[%s2727_s9] ss:$0 sm:$0xff] }
 0x115   : > { %v2024_v34 = vpop.f32.mrb[0].mxu0 }
 0x116   : > { %v1104_v35 = vadd.f32 %v2024_v34, %v2584_v33  ;;  %v1032_v36 = vpop.f32.mrb[1].mxu0 }
 0x117   : > { %v1102_v37 = vadd.f32 %v2584_v33, %v1032_v36  ;;  %v2025_v38 = vpop.f32.mrb[2].mxu0 }
 0x118   : > { %v1105_v39 = vadd.f32 %v2025_v38, %v2584_v33  ;;  %v1035_v29 = vpop.f32.mrb[3].mxu0  ;;  %v1120_v41 = vmax.f32 %v1104_v35, 0.0 }
 0x119   : > { %v1103_v40 = vadd.f32 %v2584_v33, %v1035_v29  ;;  %v1118_v44 = vmax.f32 %v1102_v37, 0.0 }
 0x11a   : > { %v1121_v43 = vmax.f32 %v1105_v39, 0.0 }
 0x11b   : > { %v1119_v46 = vmax.f32 %v1103_v40, 0.0 }
 0x11c   : > { %v1135_v47 = vpack.c.bf16 %v1121_v43, %v1120_v41 }
 0x11d   : > { %v1134_v45 = vpack.c.bf16 %v1119_v46, %v1118_v44  ;;  %v2028_v49 = vpop.f32.mrb[4].mxu0 }
 0x11e   : > { %v1108_v50 = vadd.f32 %v2028_v49, %v2584_v33  ;;  %v1048_v51 = vpop.f32.mrb[5].mxu0 }
 0x11f   : > { %v1106_v52 = vadd.f32 %v2584_v33, %v1048_v51  ;;  %v2029_v53 = vpop.f32.mrb[6].mxu0  ;;  %2046 = vmatprep.mubr.msk.bf16.mxu0 %vm1181_vm1, %v1134_v45 }
 0x120   : > { %v1109_v54 = vadd.f32 %v2029_v53, %v2584_v33  ;;  %v1051_v55 = vpop.f32.mrb[7].mxu0  ;;  %2047 = vmatmul.mubr.msk.bf16.vlgmr.msra.gmra.mrb[16].mxu0 %vm1181_vm1, %v1135_v47  ;;  %v1124_v42 = vmax.f32 %v1108_v50, 0.0 }
 0x121   : > { %v1107_v56 = vadd.f32 %v2584_v33, %v1051_v55  ;;  %v1122_v59 = vmax.f32 %v1106_v52, 0.0 }
 0x122   : > { %v1125_v57 = vmax.f32 %v1109_v54, 0.0 }
 0x123   : > { %v1123_v58 = vmax.f32 %v1107_v56, 0.0 }
 0x124   : > { %v1137_v60 = vpack.c.bf16 %v1125_v57, %v1124_v42 }
 0x125   : > { %v2032_v61 = vpop.f32.mrb[8].mxu0  ;;  %v1136_v48 = vpack.c.bf16 %v1123_v58, %v1122_v59 }
 0x126   : > { %v1112_v63 = vadd.f32 %v2032_v61, %v2584_v33  ;;  %v1064_v1 = vpop.f32.mrb[9].mxu0 }
 0x127   : > { %v1110_v3 = vadd.f32 %v2584_v33, %v1064_v1  ;;  %v2033_v6 = vpop.f32.mrb[10].mxu0  ;;  %2050 = vmatprep.mubr.msk.bf16.mxu1 %vm1181_vm1, %v1136_v48 }
 0x128   : > { %v1113_v7 = vadd.f32 %v2033_v6, %v2584_v33  ;;  %v1067_v8 = vpop.f32.mrb[11].mxu0  ;;  %2051 = vmatmul.mubr.msk.bf16.vlgmr.msra.gmra.mrb[0].mxu1 %vm1181_vm1, %v1137_v60  ;;  %v1128_v9 = vmax.f32 %v1112_v63, 0.0 }
 0x129   : > { %v1111_v0 = vadd.f32 %v2584_v33, %v1067_v8  ;;  %2063 = vmatpush3.bf16.msra.mxu1 %v2201_v16  ;;  %v1126_v13 = vmax.f32 %v1110_v3, 0.0 }
 0x12a   : > { %v1129_v11 = vmax.f32 %v1113_v7, 0.0  ;;  %2064 = vmatprep.subr.bf16.mxu1 %v2202_v2 }
 0x12b   : > { %v1127_v14 = vmax.f32 %v1111_v0, 0.0  ;;  %v2205_v0 = vld [vmem:[%s2730_s12] sm:$0xff]  }
 0x12c   : > { %v1139_v15 = vpack.c.bf16 %v1129_v11, %v1128_v9  ;;  %2086 = vmatprep.subr.bf16.mxu0 %v2205_v0  ;;  %v2206_v9 = vld [vmem:[%s2730_s12 + $0x8] sm:$0xff]   ;;  %v1907_v11 = vld [vmem:[%s2729_s11] ss:$0 sm:$0xff] }
 0x12d   : > { %v1138_v4 = vpack.c.bf16 %v1127_v14, %v1126_v13  ;;  %v2036_v17 = vpop.f32.mrb[12].mxu0  ;;  %2065 = vmatpush3.bf16.msra.mxu1 %v2202_v2  ;;  %2087 = vmatpush3.bf16.msra.mxu0 %v2205_v0 }
 0x12e   : > { %v1116_v18 = vadd.f32 %v2036_v17, %v2584_v33  ;;  %v1080_v19 = vpop.f32.mrb[13].mxu0  ;;  %2066 = vmatprep.subr.bf16.mxu1 %v2203_v12  ;;  %2088 = vmatprep.subr.bf16.mxu0 %v2206_v9 }
 0x12f   : > { %v1114_v62 = vadd.f32 %v2584_v33, %v1080_v19  ;;  %v2037_v20 = vpop.f32.mrb[14].mxu0  ;;  %2054 = vmatprep.mubr.msk.bf16.mxu1 %vm1181_vm1, %v1138_v4 }
 0x130   : > { %v1117_v10 = vadd.f32 %v2037_v20, %v2584_v33  ;;  %v1083_v21 = vpop.f32.mrb[15].mxu0  ;;  %2055 = vmatmul.mubr.msk.bf16.gmra.mrb[4].mxu1 %vm1181_vm1, %v1139_v15  ;;  %v1132_v23 = vmax.f32 %v1116_v18, 0.0 }
 0x131   : > { %v1115_v22 = vadd.f32 %v2584_v33, %v1083_v21  ;;  %2067 = vmatpush3.bf16.msra.mxu1 %v2203_v12  ;;  %v1130_v24 = vmax.f32 %v1114_v62, 0.0  ;;  %2089 = vmatpush3.bf16.msra.mxu0 %v2206_v9 }
 0x132   : > { %v1133_v5 = vmax.f32 %v1117_v10, 0.0  ;;  %2068 = vmatprep.subr.bf16.mxu1 %v2204_v28 }
 0x133   : > { %v1131_v25 = vmax.f32 %v1115_v22, 0.0 }
 0x134   : > { %v1141_v26 = vpack.c.bf16 %v1133_v5, %v1132_v23 }
 0x135   : > { %v1140_v27 = vpack.c.bf16 %v1131_v25, %v1130_v24  ;;  %2069 = vmatpush3.bf16.msra.mxu1 %v2204_v28 }
 0x137   : > { %2058 = vmatprep.mubr.msk.bf16.mxu1 %vm1181_vm1, %v1140_v27 }
 0x138   : > { %2059 = vmatmul.mubr.msk.bf16.gmra.mrb[8].mxu1 %vm1181_vm1, %v1141_v26 }
 0x1f3   : > { %v2048_v30 = vpop.f32.mrb[16].mxu0 }
 0x1f4   : > { %v1240_v32 = vpop.f32.mrb[17].mxu0  ;;  %v1249_v33 = vadd.f32 %v2048_v30, %v1894_v31 }
 0x1f5   : > { %v2049_v16 = vpop.f32.mrb[18].mxu0  ;;  %v1241_v36 = vadd.f32 %v1894_v31, %v1240_v32 }
 0x1f6   : > { %v1252_v34 = vadd.f32 %v2049_v16, %v1894_v31  ;;  %v1243_v35 = vpop.f32.mrb[19].mxu0 }
 0x1f7   : > { %v1244_v37 = vadd.f32 %v1894_v31, %v1243_v35 }
 0x1f8   : > { %v1304_v38 = vpack.c.bf16 %v1252_v34, %v1249_v33 }
 0x1f9   : > { %v1303_v39 = vpack.c.bf16 %v1244_v37, %v1241_v36 }
 0x1fb   : > { %v2052_v29 = vpop.f32.mrb[0].mxu1  ;;  %2070 = vmatprep.mubr.msk.bf16.mxu1 %vm1181_vm1, %v1303_v39 }
 0x1fc   : > { %v1256_v40 = vpop.f32.mrb[1].mxu1  ;;  %2071 = vmatmul.mubr.msk.bf16.vlgmr.msra.gmra.mrb[12].mxu1 %vm1181_vm1, %v1304_v38  ;;  %v1265_v43 = vadd.f32 %v2052_v29, %v1894_v31 }
 0x1fd   : > { %v2053_v41 = vpop.f32.mrb[2].mxu1  ;;  %v1257_v47 = vadd.f32 %v1894_v31, %v1256_v40 }
 0x1fe   : > { %v1268_v44 = vadd.f32 %v2053_v41, %v1894_v31  ;;  %v1259_v46 = vpop.f32.mrb[3].mxu1 }
 0x1ff   : > { %v1260_v45 = vadd.f32 %v1894_v31, %v1259_v46 }
 0x200   : > { %v1306_v49 = vpack.c.bf16 %v1268_v44, %v1265_v43 }
 0x201   : > { %v1305_v50 = vpack.c.bf16 %v1260_v45, %v1257_v47 }
 0x203   : > { %v2056_v51 = vpop.f32.mrb[4].mxu1  ;;  %2074 = vmatprep.mubr.msk.bf16.mxu1 %vm1181_vm1, %v1305_v50 }
 0x204   : > { %v1272_v52 = vpop.f32.mrb[5].mxu1  ;;  %2075 = vmatmul.mubr.msk.bf16.gmra.mrb[16].mxu1 %vm1181_vm1, %v1306_v49  ;;  %v1281_v54 = vadd.f32 %v2056_v51, %v1894_v31 }
 0x205   : > { %v2057_v53 = vpop.f32.mrb[6].mxu1  ;;  %v1273_v42 = vadd.f32 %v1894_v31, %v1272_v52 }
 0x206   : > { %v1284_v55 = vadd.f32 %v2057_v53, %v1894_v31  ;;  %v1275_v56 = vpop.f32.mrb[7].mxu1 }
 0x207   : > { %v1276_v57 = vadd.f32 %v1894_v31, %v1275_v56 }
 0x208   : > { %v1308_v59 = vpack.c.bf16 %v1284_v55, %v1281_v54 }
 0x209   : > { %v1307_v58 = vpack.c.bf16 %v1276_v57, %v1273_v42 }
 0x20b   : > { %v2060_v60 = vpop.f32.mrb[8].mxu1  ;;  %2078 = vmatprep.mubr.msk.bf16.mxu1 %vm1181_vm1, %v1307_v58 }
 0x20c   : > { %v1288_v61 = vpop.f32.mrb[9].mxu1  ;;  %2079 = vmatmul.mubr.msk.bf16.gmra.mrb[20].mxu1 %vm1181_vm1, %v1308_v59  ;;  %v1297_v63 = vadd.f32 %v2060_v60, %v1894_v31 }
 0x20d   : > { %v2061_v48 = vpop.f32.mrb[10].mxu1  ;;  %v1289_v3 = vadd.f32 %v1894_v31, %v1288_v61 }
 0x20e   : > { %v1300_v1 = vadd.f32 %v2061_v48, %v1894_v31  ;;  %v1291_v2 = vpop.f32.mrb[11].mxu1 }
 0x20f   : > { %v1292_v6 = vadd.f32 %v1894_v31, %v1291_v2  ;;  %v2271_v2 = vmov 0.0  }
 0x210   : > { %v1310_v7 = vpack.c.bf16 %v1300_v1, %v1297_v63  ;;  %2106 = vmatprep.subr.bf16.mxu1 %v2271_v2 }
 0x211   : > { %v1309_v8 = vpack.c.bf16 %v1292_v6, %v1289_v3  ;;  %v1664_v3 = vld [vmem:[#allocation2] sm:$0x1]  ;;  %v2273_v6 = vmov 0  }
 0x212   : > { %2192 = vset.pattern.permute.xlu0 %v2273_v6 }
 0x213   : > { %2082 = vmatprep.mubr.msk.bf16.mxu1 %vm1181_vm1, %v1309_v8  ;;  %1667 = vperm.xlu0 %2192, %v1664_v3  }
 0x214   : > { %2083 = vmatmul.mubr.msk.bf16.gmra.mrb[24].mxu1 %vm1181_vm1, %v1310_v7  ;;  %v1920_v7 = vld [vmem:[%s2731_s13] ss:$0 sm:$0xff] }
 0x215   : > { %2122 = vmatprep.mubr.msk.bf16.mxu1 %vm2272_vm2, %v2271_v2 }
 0x2cf   : > { %v2072_v12 = vpop.f32.mrb[12].mxu1 }
 0x2d0   : > { %v1417_v13 = vadd.f32 %v2072_v12, %v1907_v11  ;;  %v1408_v14 = vpop.f32.mrb[13].mxu1 }
 0x2d1   : > { %v1409_v15 = vadd.f32 %v1907_v11, %v1408_v14  ;;  %v2073_v4 = vpop.f32.mrb[14].mxu1 }
 0x2d2   : > { %v1420_v17 = vadd.f32 %v2073_v4, %v1907_v11  ;;  %v1411_v18 = vpop.f32.mrb[15].mxu1  ;;  %v1473_v62 = vmax.f32 %v1417_v13, 0.0 }
 0x2d3   : > { %v1412_v19 = vadd.f32 %v1907_v11, %v1411_v18  ;;  %v1471_v10 = vmax.f32 %v1409_v15, 0.0 }
 0x2d4   : > { %v1474_v20 = vmax.f32 %v1420_v17, 0.0 }
 0x2d5   : > { %v1472_v21 = vmax.f32 %v1412_v19, 0.0 }
 0x2d6   : > { %v1488_v22 = vpack.c.bf16 %v1474_v20, %v1473_v62 }
 0x2d7   : > { %v1487_v23 = vpack.c.bf16 %v1472_v21, %v1471_v10  ;;  %v2076_v5 = vpop.f32.mrb[16].mxu1 }
 0x2d8   : > { %v1433_v24 = vadd.f32 %v2076_v5, %v1907_v11  ;;  %v1424_v25 = vpop.f32.mrb[17].mxu1 }
 0x2d9   : > { %v1425_v26 = vadd.f32 %v1907_v11, %v1424_v25  ;;  %v2077_v27 = vpop.f32.mrb[18].mxu1  ;;  %2090 = vmatprep.mubr.msk.bf16.mxu0 %vm840_vm0, %v1487_v23 }
 0x2da   : > { %v1436_v28 = vadd.f32 %v2077_v27, %v1907_v11  ;;  %v1427_v30 = vpop.f32.mrb[19].mxu1  ;;  %2091 = vmatmul.mubr.msk.bf16.vlgmr.msra.gmra.mrb[20].mxu0 %vm840_vm0, %v1488_v22  ;;  %v1477_v32 = vmax.f32 %v1433_v24, 0.0 }
 0x2db   : > { %v1428_v31 = vadd.f32 %v1907_v11, %v1427_v30  ;;  %v1475_v33 = vmax.f32 %v1425_v26, 0.0 }
 0x2dc   : > { %v1478_v16 = vmax.f32 %v1436_v28, 0.0 }
 0x2dd   : > { %v1476_v34 = vmax.f32 %v1428_v31, 0.0 }
 0x2de   : > { %v1490_v35 = vpack.c.bf16 %v1478_v16, %v1477_v32 }
 0x2df   : > { %v1489_v36 = vpack.c.bf16 %v1476_v34, %v1475_v33  ;;  %v2080_v37 = vpop.f32.mrb[20].mxu1 }
 0x2e0   : > { %v1449_v38 = vadd.f32 %v2080_v37, %v1907_v11  ;;  %v1440_v39 = vpop.f32.mrb[21].mxu1 }
 0x2e1   : > { %v1441_v29 = vadd.f32 %v1907_v11, %v1440_v39  ;;  %v2081_v40 = vpop.f32.mrb[22].mxu1  ;;  %2094 = vmatprep.mubr.msk.bf16.mxu0 %vm840_vm0, %v1489_v36 }
 0x2e2   : > { %v1452_v41 = vadd.f32 %v2081_v40, %v1907_v11  ;;  %v1443_v43 = vpop.f32.mrb[23].mxu1  ;;  %2095 = vmatmul.mubr.msk.bf16.gmra.mrb[24].mxu0 %vm840_vm0, %v1490_v35  ;;  %v1481_v46 = vmax.f32 %v1449_v38, 0.0 }
 0x2e3   : > { %v1444_v44 = vadd.f32 %v1907_v11, %v1443_v43  ;;  %v1479_v45 = vmax.f32 %v1441_v29, 0.0 }
 0x2e4   : > { %v1482_v47 = vmax.f32 %v1452_v41, 0.0 }
 0x2e5   : > { %v1480_v49 = vmax.f32 %v1444_v44, 0.0 }
 0x2e6   : > { %v1492_v50 = vpack.c.bf16 %v1482_v47, %v1481_v46 }
 0x2e7   : > { %v1491_v51 = vpack.c.bf16 %v1480_v49, %v1479_v45  ;;  %v2084_v52 = vpop.f32.mrb[24].mxu1 }
 0x2e8   : > { %v1465_v53 = vadd.f32 %v2084_v52, %v1907_v11  ;;  %v1456_v54 = vpop.f32.mrb[25].mxu1 }
 0x2e9   : > { %v1457_v55 = vadd.f32 %v1907_v11, %v1456_v54  ;;  %v2085_v56 = vpop.f32.mrb[26].mxu1  ;;  %2098 = vmatprep.mubr.msk.bf16.mxu0 %vm840_vm0, %v1491_v51 }
 0x2ea   : > { %v1468_v42 = vadd.f32 %v2085_v56, %v1907_v11  ;;  %v1459_v57 = vpop.f32.mrb[27].mxu1  ;;  %2099 = vmatmul.mubr.msk.bf16.gmra.mrb[28].mxu0 %vm840_vm0, %v1492_v50  ;;  %v1485_v58 = vmax.f32 %v1465_v53, 0.0 }
 0x2eb   : > { %v1460_v59 = vadd.f32 %v1907_v11, %v1459_v57  ;;  %v1483_v61 = vmax.f32 %v1457_v55, 0.0 }
 0x2ec   : > { %v1486_v60 = vmax.f32 %v1468_v42, 0.0 }
 0x2ed   : > { %v1484_v48 = vmax.f32 %v1460_v59, 0.0 }
 0x2ee   : > { %v1494_v63 = vpack.c.bf16 %v1486_v60, %v1485_v58 }
 0x2ef   : > { %v1493_v1 = vpack.c.bf16 %v1484_v48, %v1483_v61 }
 0x2f1   : > { %2102 = vmatprep.mubr.msk.bf16.mxu0 %vm840_vm0, %v1493_v1 }
 0x2f2   : > { %2103 = vmatmul.mubr.msk.bf16.gmra.mrb[32].mxu0 %vm840_vm0, %v1494_v63 }
 0x3ad   : > { %v2092_v8 = vpop.f32.mrb[20].mxu0 }
 0x3ae   : > { %v1585_v0 = vadd.f32 %v2092_v8, %v1920_v7  ;;  %v1576_v9 = vpop.f32.mrb[21].mxu0 }
 0x3af   : > { %v1577_v11 = vadd.f32 %v1920_v7, %v1576_v9  ;;  %v2093_v12 = vpop.f32.mrb[22].mxu0  ;;  %v1670_v9 = vlaneseq }
 0x3b0   : > { %v1588_v13 = vadd.f32 %v2093_v12, %v1920_v7  ;;  %v1579_v14 = vpop.f32.mrb[23].mxu0  ;;  %v1641_v4 = vmax.f32 %v1585_v0, 0.0  ;;  %v1655_v0 = vld [vmem:[%s2732_s14] sm:$0x1] }
 0x3b1   : > { %v1580_v15 = vadd.f32 %v1920_v7, %v1579_v14  ;;  %v1639_v18 = vmax.f32 %v1577_v11, 0.0  ;;  %v1671_v11 = vshrl.u32 %v1670_v9, 7 }
 0x3b2   : > { %v1642_v17 = vmax.f32 %v1588_v13, 0.0  ;;  %v1668_v13 = vpop.permute.xlu0 %1667 }
 0x3b3   : > { %v1640_v19 = vmax.f32 %v1580_v15, 0.0  ;;  %v1672_v12 = vsub.s32 0, %v1671_v11 }
 0x3b4   : > { %v1657_v62 = vpack.c.bf16 %v1642_v17, %v1641_v4 }
 0x3b5   : > { %v1656_v20 = vpack.c.bf16 %v1640_v19, %v1639_v18  ;;  %v2096_v10 = vpop.f32.mrb[24].mxu0  ;;  %v1673_v14 = vrot.slane %v1668_v13, %v1672_v12 }
 0x3b6   : > { %v1601_v21 = vadd.f32 %v2096_v10, %v1920_v7  ;;  %v1592_v22 = vpop.f32.mrb[25].mxu0  ;;  %v1682_v39 = vsel %vm1674_vm3, %v1657_v62, 0 }
 0x3b7   : > { %v1593_v23 = vadd.f32 %v1920_v7, %v1592_v22  ;;  %v2097_v5 = vpop.f32.mrb[26].mxu0  ;;  %v1679_v24 = vsel %vm1674_vm3, %v1656_v20, 0 }
 0x3b8   : > { %v1604_v25 = vadd.f32 %v2097_v5, %v1920_v7  ;;  %v1595_v26 = vpop.f32.mrb[27].mxu0  ;;  %2107 = vmatpush3.bf16.xpose.msra.mxu1 %v1679_v24  ;;  %v1645_v28 = vmax.f32 %v1601_v21, 0.0 }
 0x3b9   : > { %v1596_v27 = vadd.f32 %v1920_v7, %v1595_v26  ;;  %2108 = vmatprep.subr.bf16.mxu1 %v2271_v2  ;;  %v1643_v31 = vmax.f32 %v1593_v23, 0.0 }
 0x3ba   : > { %v1646_v30 = vmax.f32 %v1604_v25, 0.0 }
 0x3bb   : > { %v1644_v32 = vmax.f32 %v1596_v27, 0.0 }
 0x3bc   : > { %v1659_v16 = vpack.c.bf16 %v1646_v30, %v1645_v28 }
 0x3bd   : > { %v1658_v33 = vpack.c.bf16 %v1644_v32, %v1643_v31  ;;  %v2100_v34 = vpop.f32.mrb[28].mxu0 }
 0x3be   : > { %v1617_v35 = vadd.f32 %v2100_v34, %v1920_v7  ;;  %v1608_v36 = vpop.f32.mrb[29].mxu0  ;;  %v1688_v1 = vsel %vm1674_vm3, %v1659_v16, 0 }
 0x3bf   : > { %v1609_v37 = vadd.f32 %v1920_v7, %v1608_v36  ;;  %v2101_v38 = vpop.f32.mrb[30].mxu0  ;;  %v1685_v55 = vsel %vm1674_vm3, %v1658_v33, 0 }
 0x3c0   : > { %v1620_v29 = vadd.f32 %v2101_v38, %v1920_v7  ;;  %v1611_v40 = vpop.f32.mrb[31].mxu0  ;;  %2109 = vmatpush3.bf16.xpose.msra.mxu1 %v1682_v39  ;;  %v1649_v43 = vmax.f32 %v1617_v35, 0.0 }
 0x3c1   : > { %v1612_v41 = vadd.f32 %v1920_v7, %v1611_v40  ;;  %2110 = vmatprep.subr.bf16.mxu1 %v2271_v2  ;;  %v1647_v46 = vmax.f32 %v1609_v37, 0.0 }
 0x3c2   : > { %v1650_v44 = vmax.f32 %v1620_v29, 0.0 }
 0x3c3   : > { %v1648_v47 = vmax.f32 %v1612_v41, 0.0 }
 0x3c4   : > { %v1661_v45 = vpack.c.bf16 %v1650_v44, %v1649_v43 }
 0x3c5   : > { %v1660_v49 = vpack.c.bf16 %v1648_v47, %v1647_v46  ;;  %v2104_v50 = vpop.f32.mrb[32].mxu0 }
 0x3c6   : > { %v1633_v51 = vadd.f32 %v2104_v50, %v1920_v7  ;;  %v1624_v52 = vpop.f32.mrb[33].mxu0  ;;  %v1694_v6 = vsel %vm1674_vm3, %v1661_v45, 0 }
 0x3c7   : > { %v1625_v53 = vadd.f32 %v1920_v7, %v1624_v52  ;;  %v2105_v54 = vpop.f32.mrb[34].mxu0  ;;  %v1691_v3 = vsel %vm1674_vm3, %v1660_v49, 0 }
 0x3c8   : > { %v1636_v56 = vadd.f32 %v2105_v54, %v1920_v7  ;;  %v1627_v42 = vpop.f32.mrb[35].mxu0  ;;  %2111 = vmatpush3.bf16.xpose.msra.mxu1 %v1685_v55  ;;  %v1653_v59 = vmax.f32 %v1633_v51, 0.0 }
 0x3c9   : > { %v1628_v57 = vadd.f32 %v1920_v7, %v1627_v42  ;;  %2112 = vmatprep.subr.bf16.mxu1 %v2271_v2  ;;  %v1651_v60 = vmax.f32 %v1625_v53, 0.0 }
 0x3ca   : > { %v1654_v58 = vmax.f32 %v1636_v56, 0.0 }
 0x3cb   : > { %v1652_v61 = vmax.f32 %v1628_v57, 0.0 }
 0x3cc   : > { %v1663_v48 = vpack.c.bf16 %v1654_v58, %v1653_v59 }
 0x3cd   : > { %v1662_v63 = vpack.c.bf16 %v1652_v61, %v1651_v60 }
 0x3ce   : > { %v1700_v8 = vsel %vm1674_vm3, %v1663_v48, 0 }
 0x3cf   : > { %v1697_v7 = vsel %vm1674_vm3, %v1662_v63, 0 }
 0x3d0   : > { %2113 = vmatpush3.bf16.xpose.msra.mxu1 %v1688_v1 }
 0x3d1   : > { %2114 = vmatprep.subr.bf16.mxu1 %v2271_v2 }
 0x3d8   : > { %2115 = vmatpush3.bf16.xpose.msra.mxu1 %v1691_v3 }
 0x3d9   : > { %2116 = vmatprep.subr.bf16.mxu1 %v2271_v2 }
 0x3e0   : > { %2117 = vmatpush3.bf16.xpose.msra.mxu1 %v1694_v6 }
 0x3e1   : > { %2118 = vmatprep.subr.bf16.mxu1 %v2271_v2 }
 0x3e8   : > { %2119 = vmatpush3.bf16.xpose.msra.mxu1 %v1697_v7 }
 0x3e9   : > { %2120 = vmatprep.subr.bf16.mxu1 %v2271_v2 }
 0x3f0   : > { %2121 = vmatpush3.bf16.xpose.msra.mxu1 %v1700_v8 }
 0x3f7   : > { %2123 = vmatmul.mubr.msk.bf16.vlgmr.msra.gmra.mrb[28].mxu1 %vm1674_vm3, %v1655_v0 }
 0x4ca   : > { %v1736_v2 = vpop.f32.mrb[28].mxu1 }
 0x4cb   : > { %v1737_v15 = vadd.f32 %v1736_v2, %v1673_v14  ;;  %v2124_v4 = vpop.f32.mrb[29].mxu1 }
 0x4cc   : > { %v1739_v17 = vpop.f32.mrb[30].mxu1 }
 0x4cd   : > { %1742 = vst [vmem:[%s580_s30] sm:$0x1] %v1737_v15  ;;  %v2125_v18 = vpop.f32.mrb[31].mxu1 }
 0x4ce   : > { %2220 = shalt.err (!%p2217_p3)
}
 0x4cf   : > { %s2221_s21 = scalar_lea.hbm %s2676_s20, 16  ;;  %s2225_s6 = scalar_lea.hbm %s2734_s16, 48 }
 0x4d0   : > { %p2222_p4 = scmp.ne.s32.totalorder %s2676_s20, %s2221_s21  ;;  %p2226_p9 = scmp.lt.u32.totalorder %s2676_s20, %s2734_s16 }
 0x4d1   : > { %p2227_p10 = scmp.lt.u32.totalorder %s2225_s6, %s2221_s21  ;;  %p2229_p12 = scmp.lt.u32.totalorder %s2221_s21, %s2676_s20 }
 0x4d2   : > { %p2223_p7 = pnand %p2222_p4, %p2398_p5 }
 0x4d3   : > { %p2228_p11 = por %p2227_p10, %p2226_p9 }
 0x4d4   : > { %p2224_p8 = pneg %p2223_p7 }
 0x4d5   : > { %p2230_p13 = por %p2229_p12, %p2228_p11 }
 0x4d7   : > { %p2231_p0 = pnand %p2230_p13, %p2224_p8 }
 0x4d9   : > { %2234 = shalt.err (!%p2231_p0)
}
 0x4da   : > { %2150 = dma.vmem_to_hbm [thread:$0]  (%p2398_p5), %s2678_s22, 16, %s2676_s20, %s1744_s27  }
 0x4db PF: > { %p2156_p1 = scmp.ge.s32.totalorder %s2269_s26, 2  ;;  %s1768_s25 = sand.u32 1, %s2257_s23  }
 0x4dc   : > { %s1769_s1 = scalar_lea.sflag [#allocation4], %s1768_s25 }
 0x4dd   : > { %p2153_p2 = pnand %p2156_p1, %p2402_p6 }
 0x4df   : > { %2252 = dma.done.wait (!%p2153_p2), %s1769_s1, 16  }
 0x4e0   : > { %2254 = vsyncadd (!%p2153_p2), %s1769_s1, 4294967280  ;;  %s2746_s15 = sld [smem:[#allocation6_spill]]  ;;  %s2747_s25 = sld [smem:[#allocation7_spill]] }
 0x4e1   : > { %p28_p3 = scmp.ge.s32.totalorder %s2386_s28, 5   ;;  %s2748_s23 = smov %s2261_s24 }
 0x4e2   : > { %s2750_s26 = smov %s2386_s28 }
 0x4e3   :  { %30 = sbr.rel (!%p28_p3) target bundleno = 7 (0x7), region = 131 }
 0x4e6   : > { %s2749_s24 = smov %s2746_s15 }
 0x4ea   :  { %1773 = vsyncpa [#allocation4], 1 }
 0x4eb   :  { %1775 = vsyncpa [#allocation4 + $0x1], 1 }

</bundles_post_ra>
